<compile_context>
chip_gen: v7x
topology: tpu7x:2x2x1
jax: 0.10.0
libtpu: 0.0.40
codegen_flags: <defaults>
</compile_context>

<pallas_src>
import functools

import jax
import jax.numpy as jnp
from jax.experimental import pallas as pl
from jax.experimental.pallas import tpu as pltpu

HIDDEN = 768
NUM_CLASSES = 2


def _round_up(x, m):
    return (x + m - 1) // m * m


def _head_kernel(x_ref, w_ref, b_ref, logits_ref):
    # x_ref: [tb, H] f32 CLS rows (DMA'd directly from the full hidden state),
    # w_ref: [H, C] f32, b_ref: [1, C] f32.
    logits = jnp.dot(x_ref[...], w_ref[...], preferred_element_type=jnp.float32)
    logits_ref[...] = (logits + b_ref[...]).astype(logits_ref.dtype)


def _head_loss_kernel(x_ref, w_ref, b_ref, lab_ref, logits_ref, loss_part_ref,
                      *, batch, block_b):
    i = pl.program_id(0)

    logits = jnp.dot(x_ref[...], w_ref[...], preferred_element_type=jnp.float32)
    logits = logits + b_ref[...]
    logits_ref[...] = logits.astype(logits_ref.dtype)

    # Numerically stable per-row NLL, all f32.
    m = jnp.max(logits, axis=-1, keepdims=True)                      # [tb, 1]
    lse = m + jnp.log(jnp.sum(jnp.exp(logits - m), axis=-1, keepdims=True))
    cls_ids = jax.lax.broadcasted_iota(jnp.int32, logits.shape, 1)   # [tb, C]
    onehot = (cls_ids == lab_ref[...]).astype(jnp.float32)           # [tb, C]
    picked = jnp.sum(onehot * logits, axis=-1, keepdims=True)        # [tb, 1]
    nll = lse - picked                                               # [tb, 1]

    # Tail-row mask built in-kernel (no HBM mask array).  `where` (not a
    # multiply) so stale/garbage rows of a partial last tile can never poison
    # the sum with NaN/Inf.
    row = i * block_b + jax.lax.broadcasted_iota(jnp.int32, nll.shape, 0)
    nll = jnp.where(row < batch, nll, 0.0)

    loss_part_ref[...] = jnp.sum(nll, axis=0, keepdims=True)         # (1, 1)


def ainalyst_forward(features, w, b, labels=None, *, block_b=1024):
    """features: [B, S, H] f32 (backbone last_hidden_state),
       w: [H, C] f32, b: [C] f32, labels: [B] int32 or None."""
    B, S, H = features.shape
    C = w.shape[1]

    # Bitcast reshape (no data movement): row b, columns [0:H) of (B, S*H)
    # are exactly features[b, 0, :].  The x BlockSpec below then DMAs only the
    # CLS rows (tb strided ~3 KB copies) out of the full tensor.
    x = features.reshape(B, S * H)

    w_f = w.astype(jnp.float32)
    b2 = b.reshape(1, C).astype(jnp.float32)

    tb = min(int(block_b), _round_up(B, 8))      # batch tile, multiple of 8
    n_tiles = int(pl.cdiv(B, tb))                # partial last tile allowed

    x_spec = pl.BlockSpec((tb, H), lambda i: (i, 0))       # CLS columns only
    w_spec = pl.BlockSpec((H, C), lambda i: (0, 0))        # fetched once
    b_spec = pl.BlockSpec((1, C), lambda i: (0, 0))        # fetched once
    logits_spec = pl.BlockSpec((tb, C), lambda i: (i, 0))

    if labels is None:
        return pl.pallas_call(
            _head_kernel,
            out_shape=jax.ShapeDtypeStruct((B, C), jnp.float32),
            grid=(n_tiles,),
            in_specs=[x_spec, w_spec, b_spec],
            out_specs=logits_spec,
            compiler_params=pltpu.CompilerParams(
                dimension_semantics=("parallel",)),
        )(x, w_f, b2)

    labels_2d = jnp.asarray(labels, dtype=jnp.int32).reshape(B, 1)

    kernel = functools.partial(_head_loss_kernel, batch=B, block_b=tb)
    logits, loss_parts = pl.pallas_call(
        kernel,
        out_shape=(
            jax.ShapeDtypeStruct((B, C), jnp.float32),
            jax.ShapeDtypeStruct((n_tiles, 1), jnp.float32),
        ),
        grid=(n_tiles,),
        in_specs=[x_spec, w_spec, b_spec,
                  pl.BlockSpec((tb, 1), lambda i: (i, 0))],     # int32 labels
        out_specs=(
            logits_spec,
            pl.BlockSpec((1, 1), lambda i: (i, 0)),   # per-tile partial sums
        ),
        compiler_params=pltpu.CompilerParams(
            dimension_semantics=("parallel",)),       # no carried accumulator
    )(x, w_f, b2, labels_2d)

    loss = jnp.sum(loss_parts) / jnp.float32(B)
    return logits, loss


def _reference(features, w, b, labels):
    x = features[:, 0, :]
    logits = jnp.dot(x, w, preferred_element_type=jnp.float32) + b
    logp = jax.nn.log_softmax(logits, axis=-1)
    loss = -jnp.mean(jnp.take_along_axis(logp, labels[:, None], axis=-1))
    return logits, loss


if __name__ == "__main__":
    key = jax.random.PRNGKey(0)
    k_feat, k_w, k_b, k_lab, k_feat2, k_lab2 = jax.random.split(key, 6)

    B, S, H, C = 8, 8, HIDDEN, NUM_CLASSES
    features = jax.random.normal(k_feat, (B, S, H), dtype=jnp.float32)
    w = (jax.random.uniform(k_w, (H, C), dtype=jnp.float32) - 0.5) * (2.0 / jnp.sqrt(H))
    b = (jax.random.uniform(k_b, (C,), dtype=jnp.float32) - 0.5) * (2.0 / jnp.sqrt(H))
    labels = jax.random.randint(k_lab, (B,), 0, C, dtype=jnp.int32)

    # With labels -> (logits, loss)
    logits, loss = ainalyst_forward(features, w, b, labels)
    jax.block_until_ready((logits, loss))

    # Without labels -> logits only (loss-free kernel)
    logits_only = ainalyst_forward(features, w, b, None)
    jax.block_until_ready(logits_only)

    # Non-multiple-of-8 batch exercises the partial-tile + in-kernel mask path.
    B2 = 5
    features2 = jax.random.normal(k_feat2, (B2, S, H), dtype=jnp.float32)
    labels2 = jax.random.randint(k_lab2, (B2,), 0, C, dtype=jnp.int32)
    logits2, loss2 = ainalyst_forward(features2, w, b, labels2)
    jax.block_until_ready((logits2, loss2))

    # Pure-f32 references (kernel is now f32 end-to-end).
    ref_logits, ref_loss = _reference(features, w, b, labels)
    assert jnp.allclose(logits, ref_logits, atol=5e-3, rtol=5e-3)
    assert jnp.allclose(logits_only, ref_logits, atol=5e-3, rtol=5e-3)
    assert jnp.allclose(loss, ref_loss, atol=5e-3, rtol=5e-3)

    ref_logits2, ref_loss2 = _reference(features2, w, b, labels2)
    assert jnp.allclose(logits2, ref_logits2, atol=5e-3, rtol=5e-3)
    assert jnp.allclose(loss2, ref_loss2, atol=5e-3, rtol=5e-3)

    print("KERNEL_OK")
</pallas_src>

<mosaic_0001>
module attributes {stable_mosaic.version = 11 : i64} {
  func.func @_head_loss_kernel(%arg0: i32, %arg1: memref<8x768xf32, #tpu.memory_space<vmem>>, %arg2: memref<768x2xf32, #tpu.memory_space<vmem>>, %arg3: memref<1x2xf32, #tpu.memory_space<vmem>>, %arg4: memref<8x1xi32, #tpu.memory_space<vmem>>, %arg5: memref<8x2xf32, #tpu.memory_space<vmem>>, %arg6: memref<1x1xf32, #tpu.memory_space<vmem>>) attributes {dimension_semantics = [#tpu.dimension_semantics<parallel>], iteration_bounds = array<i64: 1>, scalar_prefetch = 0 : i64, scratch_operands = 0 : i64, tpu.core_type = #tpu.core_type<tc>, window_params = [{transform_indices = @transform_0, window_bounds = array<i64: 8, 768>}, {pipeline_mode = #tpu.pipeline_mode<synchronous>, transform_indices = @transform_1, window_bounds = array<i64: 768, 2>}, {pipeline_mode = #tpu.pipeline_mode<synchronous>, transform_indices = @transform_2, window_bounds = array<i64: 1, 2>}, {transform_indices = @transform_3, window_bounds = array<i64: 8, 1>}, {transform_indices = @transform_4, window_bounds = array<i64: 8, 2>}, {transform_indices = @transform_5, window_bounds = array<i64: 1, 1>}]} {
    %c0 = arith.constant 0 : index
    %c0_0 = arith.constant 0 : index
    %0 = vector.load %arg1[%c0, %c0_0] : memref<8x768xf32, #tpu.memory_space<vmem>>, vector<8x768xf32>
    %c0_1 = arith.constant 0 : index
    %c0_2 = arith.constant 0 : index
    %1 = vector.load %arg2[%c0_1, %c0_2] : memref<768x2xf32, #tpu.memory_space<vmem>>, vector<768x2xf32>
    %cst = arith.constant dense<0.000000e+00> : vector<8x2xf32>
    %2 = tpu.matmul %0, %1, %cst {dimension_numbers = #tpu.dot_dimension_numbers<[1], [0], [0], [1], [0, 0, 1, 1], [], []>} : vector<8x768xf32>, vector<768x2xf32>, vector<8x2xf32> -> vector<8x2xf32>
    %c0_3 = arith.constant 0 : index
    %c0_4 = arith.constant 0 : index
    %3 = vector.load %arg3[%c0_3, %c0_4] : memref<1x2xf32, #tpu.memory_space<vmem>>, vector<1x2xf32>
    %4 = vector.broadcast %3 : vector<1x2xf32> to vector<8x2xf32>
    %5 = arith.addf %2, %4 : vector<8x2xf32>
    %c0_5 = arith.constant 0 : index
    %c0_6 = arith.constant 0 : index
    %6 = vector.load %arg5[%c0_5, %c0_6] : memref<8x2xf32, #tpu.memory_space<vmem>>, vector<8x2xf32>
    tpu.vector_store %arg5[%c0_5, %c0_6], %5 {strides = array<i32>} : memref<8x2xf32, #tpu.memory_space<vmem>>, vector<8x2xf32>,
    %cst_7 = arith.constant dense<0xFF800000> : vector<8xf32>
    %7 = vector.multi_reduction <maximumf>, %5, %cst_7 [1] : vector<8x2xf32> to vector<8xf32>
    %8 = vector.shape_cast %7 : vector<8xf32> to vector<8x1xf32>
    %9 = vector.broadcast %8 : vector<8x1xf32> to vector<8x2xf32>
    %10 = arith.subf %5, %9 : vector<8x2xf32>
    %11 = math.exp %10 : vector<8x2xf32>
    %cst_8 = arith.constant dense<0.000000e+00> : vector<8xf32>
    %12 = vector.multi_reduction <add>, %11, %cst_8 [1] : vector<8x2xf32> to vector<8xf32>
    %13 = vector.shape_cast %12 : vector<8xf32> to vector<8x1xf32>
    %14 = math.log %13 : vector<8x1xf32>
    %15 = arith.addf %8, %14 : vector<8x1xf32>
    %16 = tpu.iota {dimensions = array<i32: 1>} : vector<8x2xi32>
    %c0_9 = arith.constant 0 : index
    %c0_10 = arith.constant 0 : index
    %17 = vector.load %arg4[%c0_9, %c0_10] : memref<8x1xi32, #tpu.memory_space<vmem>>, vector<8x1xi32>
    %18 = vector.broadcast %17 : vector<8x1xi32> to vector<8x2xi32>
    %19 = arith.cmpi eq, %16, %18 : vector<8x2xi32>
    %20 = arith.extui %19 : vector<8x2xi1> to vector<8x2xi32>
    %21 = arith.sitofp %20 : vector<8x2xi32> to vector<8x2xf32>
    %22 = arith.mulf %21, %5 : vector<8x2xf32>
    %cst_11 = arith.constant dense<0.000000e+00> : vector<8xf32>
    %23 = vector.multi_reduction <add>, %22, %cst_11 [1] : vector<8x2xf32> to vector<8xf32>
    %24 = vector.shape_cast %23 : vector<8xf32> to vector<8x1xf32>
    %25 = arith.subf %15, %24 : vector<8x1xf32>
    %c8_i32 = arith.constant 8 : i32
    %26 = arith.muli %arg0, %c8_i32 : i32
    %27 = tpu.iota {dimensions = array<i32: 0>} : vector<8x1xi32>
    %28 = vector.broadcast %26 : i32 to vector<8x1xi32>
    %29 = arith.addi %28, %27 : vector<8x1xi32>
    %c8_i32_12 = arith.constant 8 : i32
    %30 = vector.broadcast %c8_i32_12 : i32 to vector<8x1xi32>
    %31 = arith.cmpi slt, %29, %30 : vector<8x1xi32>
    %cst_13 = arith.constant 0.000000e+00 : f32
    %32 = vector.broadcast %cst_13 : f32 to vector<8x1xf32>
    %33 = arith.select %31, %25, %32 : vector<8x1xi1>, vector<8x1xf32>
    %cst_14 = arith.constant dense<0.000000e+00> : vector<1xf32>
    %34 = vector.multi_reduction <add>, %33, %cst_14 [0] : vector<8x1xf32> to vector<1xf32>
    %35 = vector.shape_cast %34 : vector<1xf32> to vector<1x1xf32>
    %c0_15 = arith.constant 0 : index
    %c0_16 = arith.constant 0 : index
    %36 = vector.load %arg6[%c0_15, %c0_16] : memref<1x1xf32, #tpu.memory_space<vmem>>, vector<1x1xf32>
    tpu.vector_store %arg6[%c0_15, %c0_16], %35 {strides = array<i32>} : memref<1x1xf32, #tpu.memory_space<vmem>>, vector<1x1xf32>,
    return
  }
  func.func @transform_0(%arg0: i32) -> (i32, i32) {
    %c0_i32 = arith.constant 0 : i32
    %c0_i32_0 = arith.constant 0 : i32
    return %arg0, %c0_i32 : i32, i32
  }
  func.func @transform_1(%arg0: i32) -> (i32, i32) {
    %c0_i32 = arith.constant 0 : i32
    %c0_i32_0 = arith.constant 0 : i32
    %c0_i32_1 = arith.constant 0 : i32
    return %c0_i32, %c0_i32_0 : i32, i32
  }
  func.func @transform_2(%arg0: i32) -> (i32, i32) {
    %c0_i32 = arith.constant 0 : i32
    %c0_i32_0 = arith.constant 0 : i32
    %c0_i32_1 = arith.constant 0 : i32
    return %c0_i32, %c0_i32_0 : i32, i32
  }
  func.func @transform_3(%arg0: i32) -> (i32, i32) {
    %c0_i32 = arith.constant 0 : i32
    %c0_i32_0 = arith.constant 0 : i32
    return %arg0, %c0_i32 : i32, i32
  }
  func.func @transform_4(%arg0: i32) -> (i32, i32) {
    %c0_i32 = arith.constant 0 : i32
    %c0_i32_0 = arith.constant 0 : i32
    return %arg0, %c0_i32 : i32, i32
  }
  func.func @transform_5(%arg0: i32) -> (i32, i32) {
    %c0_i32 = arith.constant 0 : i32
    %c0_i32_0 = arith.constant 0 : i32
    return %arg0, %c0_i32 : i32, i32
  }
}

</mosaic_0001>

<bundles_post_ra>
// kernel: tpu_custom_call.1
= control target key start
LH: loop header
LB: loop body
LE: loop exit
PB: predicated region body
PF: predicated region fallthrough
CT: control target
= control target key end

     0   :  { %s999_s0 = inlined_call_operand.vmem [shape: f32[8,6144], index: 0, kind: input, shape index: {}]   ;;  %s1000_s1 = inlined_call_operand.vmem [shape: f32[768,2], index: 1, kind: input, shape index: {}]   ;;  %s1001_s2 = inlined_call_operand.vmem [shape: f32[1,2], index: 2, kind: input, shape index: {}]   ;;  %s1002_s3 = inlined_call_operand.vmem [shape: s32[8,1], index: 3, kind: input, shape index: {}]   ;;  %s1003_s4 = inlined_call_operand.vmem [shape: f32[8,2], index: 4, kind: output, shape index: {0}]   ;;  %s1004_s5 = inlined_call_operand.hbm [shape: f32[1,1], index: 5, kind: output, shape index: {1}]  }
   0x1   :  { %v42_v0 = vld [vmem:[%s1000_s1 + $0x80] sm:$0xff]  ;;  %v43_v1 = vld [vmem:[%s1000_s1 + $0x88] sm:$0xff]  ;;  %v44_v11 = vld [vmem:[%s1000_s1 + $0x90] sm:$0xff] }
   0x2   :  { %v26_v2 = vld [vmem:[%s1000_s1] sm:$0xff]  ;;  %v507_v3 = vpack.c.bf16 %v43_v1, %v42_v0  ;;  %v27_v4 = vld [vmem:[%s1000_s1 + $0x8] sm:$0xff]  ;;  %v45_v13 = vld [vmem:[%s1000_s1 + $0x98] sm:$0xff] }
   0x3   :  { %v74_v5 = vld [vmem:[%s1000_s1 + $0x180] sm:$0xff]  ;;  %v75_v6 = vld [vmem:[%s1000_s1 + $0x188] sm:$0xff]  ;;  %v509_v7 = vpack.c.bf16 %v27_v4, %v26_v2  ;;  %v28_v14 = vld [vmem:[%s1000_s1 + $0x10] sm:$0xff]  ;;  %v511_v16 = vpack.c.bf16 %v45_v13, %v44_v11 }
   0x4   :  { %v539_v8 = vpack.c.bf16 %v75_v6, %v74_v5  ;;  %v58_v9 = vld [vmem:[%s1000_s1 + $0x100] sm:$0xff]  ;;  %v59_v10 = vld [vmem:[%s1000_s1 + $0x108] sm:$0xff]  ;;  %508 = vmatprep.subr.bf16.mxu0 %v507_v3  ;;  %v29_v15 = vld [vmem:[%s1000_s1 + $0x18] sm:$0xff] }
   0x5   :  { %v541_v12 = vpack.c.bf16 %v59_v10, %v58_v9  ;;  %510 = vmatpush3.bf16.msra.mxu0 %v509_v7  ;;  %v513_v17 = vpack.c.bf16 %v29_v15, %v28_v14  ;;  %v76_v18 = vld [vmem:[%s1000_s1 + $0x190] sm:$0xff]  ;;  %v77_v19 = vld [vmem:[%s1000_s1 + $0x198] sm:$0xff]  ;;  %v46_v23 = vld [vmem:[%s1000_s1 + $0xa0] sm:$0xff] }
   0x6   :  { %540 = vmatprep.subr.bf16.mxu1 %v539_v8  ;;  %v60_v20 = vld [vmem:[%s1000_s1 + $0x110] sm:$0xff]  ;;  %v543_v21 = vpack.c.bf16 %v77_v19, %v76_v18  ;;  %v61_v22 = vld [vmem:[%s1000_s1 + $0x118] sm:$0xff]  ;;  %v47_v24 = vld [vmem:[%s1000_s1 + $0xa8] sm:$0xff]  ;;  %512 = vmatprep.subr.bf16.mxu0 %v511_v16 }
   0x7   :  { %542 = vmatpush3.bf16.msra.mxu1 %v541_v12  ;;  %v545_v25 = vpack.c.bf16 %v61_v22, %v60_v20  ;;  %v515_v26 = vpack.c.bf16 %v47_v24, %v46_v23  ;;  %v30_v27 = vld [vmem:[%s1000_s1 + $0x20] sm:$0xff]  ;;  %v31_v28 = vld [vmem:[%s1000_s1 + $0x28] sm:$0xff]  ;;  %v48_v35 = vld [vmem:[%s1000_s1 + $0xb0] sm:$0xff] }
   0x8   :  { %v78_v29 = vld [vmem:[%s1000_s1 + $0x1a0] sm:$0xff]  ;;  %544 = vmatprep.subr.bf16.mxu1 %v543_v21  ;;  %v79_v30 = vld [vmem:[%s1000_s1 + $0x1a8] sm:$0xff]  ;;  %v517_v33 = vpack.c.bf16 %v31_v28, %v30_v27  ;;  %v49_v36 = vld [vmem:[%s1000_s1 + $0xb8] sm:$0xff] }
   0x9   :  { %v62_v31 = vld [vmem:[%s1000_s1 + $0x120] sm:$0xff]  ;;  %v63_v32 = vld [vmem:[%s1000_s1 + $0x128] sm:$0xff]  ;;  %514 = vmatpush3.bf16.msra.mxu0 %v513_v17  ;;  %v547_v34 = vpack.c.bf16 %v79_v30, %v78_v29  ;;  %v32_v37 = vld [vmem:[%s1000_s1 + $0x30] sm:$0xff]  ;;  %v519_v39 = vpack.c.bf16 %v49_v36, %v48_v35 }
   0xa   :  { %516 = vmatprep.subr.bf16.mxu0 %v515_v26  ;;  %v549_v38 = vpack.c.bf16 %v63_v32, %v62_v31  ;;  %v33_v40 = vld [vmem:[%s1000_s1 + $0x38] sm:$0xff]  ;;  %v80_v41 = vld [vmem:[%s1000_s1 + $0x1b0] sm:$0xff]  ;;  %v50_v46 = vld [vmem:[%s1000_s1 + $0xc0] sm:$0xff] }
   0xb   :  { %546 = vmatpush3.bf16.msra.mxu1 %v545_v25  ;;  %v81_v42 = vld [vmem:[%s1000_s1 + $0x1b8] sm:$0xff]  ;;  %v64_v44 = vld [vmem:[%s1000_s1 + $0x130] sm:$0xff]  ;;  %v51_v47 = vld [vmem:[%s1000_s1 + $0xc8] sm:$0xff]  ;;  %v521_v48 = vpack.c.bf16 %v33_v40, %v32_v37 }
   0xc   :  { %548 = vmatprep.subr.bf16.mxu1 %v547_v34  ;;  %v551_v43 = vpack.c.bf16 %v81_v42, %v80_v41  ;;  %v65_v45 = vld [vmem:[%s1000_s1 + $0x138] sm:$0xff]  ;;  %v82_v49 = vld [vmem:[%s1000_s1 + $0x1c0] sm:$0xff]  ;;  %v83_v50 = vld [vmem:[%s1000_s1 + $0x1c8] sm:$0xff]  ;;  %v523_v52 = vpack.c.bf16 %v51_v47, %v50_v46 }
   0xd   :  { %518 = vmatpush3.bf16.msra.mxu0 %v517_v33  ;;  %v553_v51 = vpack.c.bf16 %v65_v45, %v64_v44  ;;  %v34_v53 = vld [vmem:[%s1000_s1 + $0x40] sm:$0xff]  ;;  %v35_v54 = vld [vmem:[%s1000_s1 + $0x48] sm:$0xff]  ;;  %v555_v56 = vpack.c.bf16 %v83_v50, %v82_v49  ;;  %v52_v58 = vld [vmem:[%s1000_s1 + $0xd0] sm:$0xff] }
   0xe   :  { %520 = vmatprep.subr.bf16.mxu0 %v519_v39  ;;  %v66_v55 = vld [vmem:[%s1000_s1 + $0x140] sm:$0xff]  ;;  %v67_v57 = vld [vmem:[%s1000_s1 + $0x148] sm:$0xff]  ;;  %v53_v59 = vld [vmem:[%s1000_s1 + $0xd8] sm:$0xff]  ;;  %v525_v62 = vpack.c.bf16 %v35_v54, %v34_v53 }
   0xf   :  { %550 = vmatpush3.bf16.msra.mxu1 %v549_v38  ;;  %v84_v60 = vld [vmem:[%s1000_s1 + $0x1d0] sm:$0xff]  ;;  %v85_v61 = vld [vmem:[%s1000_s1 + $0x1d8] sm:$0xff]  ;;  %v557_v63 = vpack.c.bf16 %v67_v57, %v66_v55  ;;  %v527_v0 = vpack.c.bf16 %v53_v59, %v52_v58  ;;  %v54_v6 = vld [vmem:[%s1000_s1 + $0xe0] sm:$0xff] }
  0x10   :  { %552 = vmatprep.subr.bf16.mxu1 %v551_v43  ;;  %v36_v1 = vld [vmem:[%s1000_s1 + $0x50] sm:$0xff]  ;;  %v37_v2 = vld [vmem:[%s1000_s1 + $0x58] sm:$0xff]  ;;  %v559_v4 = vpack.c.bf16 %v85_v61, %v84_v60  ;;  %v55_v7 = vld [vmem:[%s1000_s1 + $0xe8] sm:$0xff] }
  0x11   :  { %522 = vmatpush3.bf16.msra.mxu0 %v521_v48  ;;  %v68_v3 = vld [vmem:[%s1000_s1 + $0x150] sm:$0xff]  ;;  %v69_v5 = vld [vmem:[%s1000_s1 + $0x158] sm:$0xff]  ;;  %v86_v8 = vld [vmem:[%s1000_s1 + $0x1e0] sm:$0xff]  ;;  %v529_v10 = vpack.c.bf16 %v37_v2, %v36_v1  ;;  %v531_v14 = vpack.c.bf16 %v55_v7, %v54_v6 }
  0x12   :  { %524 = vmatprep.subr.bf16.mxu0 %v523_v52  ;;  %v87_v9 = vld [vmem:[%s1000_s1 + $0x1e8] sm:$0xff]  ;;  %v38_v11 = vld [vmem:[%s1000_s1 + $0x60] sm:$0xff]  ;;  %v561_v13 = vpack.c.bf16 %v69_v5, %v68_v3  ;;  %v56_v19 = vld [vmem:[%s1000_s1 + $0xf0] sm:$0xff] }
  0x13   :  { %554 = vmatpush3.bf16.msra.mxu1 %v553_v51  ;;  %v21_v12 = vld [vmem:[%s999_s0 + $0x8] sm:$0xff]  ;;  %v70_v16 = vld [vmem:[%s1000_s1 + $0x160] sm:$0xff]  ;;  %v563_v18 = vpack.c.bf16 %v87_v9, %v86_v8  ;;  %v57_v20 = vld [vmem:[%s1000_s1 + $0xf8] sm:$0xff] }
  0x14   :  { %556 = vmatprep.subr.bf16.mxu1 %v555_v56  ;;  %v39_v15 = vld [vmem:[%s1000_s1 + $0x68] sm:$0xff]  ;;  %193 = vmatprep.mubr.f32.mxu0 %v21_v12  ;;  %v23_v21 = vld [vmem:[%s999_s0 + $0x18] sm:$0xff]  ;;  %v88_v22 = vld [vmem:[%s1000_s1 + $0x1f0] sm:$0xff]  ;;  %v535_v26 = vpack.c.bf16 %v57_v20, %v56_v19 }
  0x15   :  { %526 = vmatpush3.bf16.msra.mxu0 %v525_v62  ;;  %v71_v17 = vld [vmem:[%s1000_s1 + $0x168] sm:$0xff]  ;;  %v89_v23 = vld [vmem:[%s1000_s1 + $0x1f8] sm:$0xff]  ;;  %263 = vmatprep.mubr.f32.mxu1 %v23_v21  ;;  %v533_v24 = vpack.c.bf16 %v39_v15, %v38_v11  ;;  %v40_v27 = vld [vmem:[%s1000_s1 + $0x70] sm:$0xff] }
  0x16   :  { %528 = vmatprep.subr.bf16.mxu0 %v527_v0  ;;  %v565_v25 = vpack.c.bf16 %v71_v17, %v70_v16  ;;  %v41_v28 = vld [vmem:[%s1000_s1 + $0x78] sm:$0xff]  ;;  %v72_v29 = vld [vmem:[%s1000_s1 + $0x170] sm:$0xff]  ;;  %v567_v30 = vpack.c.bf16 %v89_v23, %v88_v22  ;;  %v106_v32 = vld [vmem:[%s1000_s1 + $0x280] sm:$0xff] }
  0x17   :  { %558 = vmatpush3.bf16.msra.mxu1 %v557_v63  ;;  %v73_v31 = vld [vmem:[%s1000_s1 + $0x178] sm:$0xff]  ;;  %v107_v33 = vld [vmem:[%s1000_s1 + $0x288] sm:$0xff]  ;;  %v537_v34 = vpack.c.bf16 %v41_v28, %v40_v27  ;;  %v90_v37 = vld [vmem:[%s1000_s1 + $0x200] sm:$0xff] }
  0x18   :  { %560 = vmatprep.subr.bf16.mxu1 %v559_v4  ;;  %v569_v35 = vpack.c.bf16 %v73_v31, %v72_v29  ;;  %v571_v36 = vpack.c.bf16 %v107_v33, %v106_v32  ;;  %v91_v38 = vld [vmem:[%s1000_s1 + $0x208] sm:$0xff]  ;;  %v108_v39 = vld [vmem:[%s1000_s1 + $0x290] sm:$0xff]  ;;  %v109_v40 = vld [vmem:[%s1000_s1 + $0x298] sm:$0xff] }
  0x19   :  { %530 = vmatpush3.bf16.msra.mxu0 %v529_v10  ;;  %v20_v41 = vld [vmem:[%s999_s0] sm:$0xff]  ;;  %v573_v42 = vpack.c.bf16 %v91_v38, %v90_v37  ;;  %v22_v43 = vld [vmem:[%s999_s0 + $0x10] sm:$0xff]  ;;  %v575_v44 = vpack.c.bf16 %v109_v40, %v108_v39  ;;  %v93_v46 = vld [vmem:[%s1000_s1 + $0x218] sm:$0xff] }
  0x1a   :  { %532 = vmatprep.subr.bf16.mxu0 %v531_v14  ;;  %v92_v45 = vld [vmem:[%s1000_s1 + $0x210] sm:$0xff]  ;;  %v110_v47 = vld [vmem:[%s1000_s1 + $0x2a0] sm:$0xff]  ;;  %v111_v48 = vld [vmem:[%s1000_s1 + $0x2a8] sm:$0xff] }
  0x1b   :  { %562 = vmatpush3.bf16.msra.mxu1 %v561_v13  ;;  %v25_v49 = vld [vmem:[%s999_s0 + $0x28] sm:$0xff] }
  0x1c   :  { %564 = vmatprep.subr.bf16.mxu1 %v563_v18 }
  0x1d   :  { %534 = vmatpush3.bf16.msra.mxu0 %v533_v24 }
  0x1e   :  { %536 = vmatprep.subr.bf16.mxu0 %v535_v26 }
  0x1f   :  { %566 = vmatpush3.bf16.msra.mxu1 %v565_v25 }
  0x20   :  { %568 = vmatprep.subr.bf16.mxu1 %v567_v30 }
  0x21   :  { %538 = vmatpush3.bf16.msra.mxu0 %v537_v34 }
  0x22   :  { %572 = vmatprep.subr.bf16.mxu0 %v571_v36 }
  0x23   :  { %570 = vmatpush3.bf16.msra.mxu1 %v569_v35 }
  0x24   :  { %11 = vsyncpa [#allocation3], 0  ;;  %194 = vmatmul.mubr.f32.vlgmr.msra.gmra.mrb[0].mxu0 %v20_v41  ;;  %v577_v50 = vpack.c.bf16 %v93_v46, %v92_v45  ;;  %v579_v51 = vpack.c.bf16 %v111_v48, %v110_v47  ;;  %v94_v52 = vld [vmem:[%s1000_s1 + $0x220] sm:$0xff]  ;;  %v95_v53 = vld [vmem:[%s1000_s1 + $0x228] sm:$0xff]  ;;  %v635_v22 = vmov 0   ;;  %vm339_vm0 = vcmask 15360  }
  0x25   :  { %574 = vmatpush3.bf16.msra.mxu0 %v573_v42  ;;  %333 = vmatprep.mubr.f32.mxu0 %v25_v49  ;;  %v112_v54 = vld [vmem:[%s1000_s1 + $0x2b0] sm:$0xff]  ;;  %v113_v55 = vld [vmem:[%s1000_s1 + $0x2b8] sm:$0xff]  ;;  %v581_v56 = vpack.c.bf16 %v95_v53, %v94_v52  ;;  %v114_v60 = vld [vmem:[%s1000_s1 + $0x2c0] sm:$0xff]  ;;  %v353_v40 = vlaneseq  ;;  %vm380_vm2 = vcmask 0  }
  0x26   :  { %264 = vmatmul.mubr.f32.vlgmr.msra.gmra.mrb[0].mxu1 %v22_v43  ;;  %576 = vmatprep.subr.bf16.mxu0 %v575_v44  ;;  %v583_v57 = vpack.c.bf16 %v113_v55, %v112_v54  ;;  %v96_v58 = vld [vmem:[%s1000_s1 + $0x230] sm:$0xff]  ;;  %v97_v59 = vld [vmem:[%s1000_s1 + $0x238] sm:$0xff]  ;;  %v115_v61 = vld [vmem:[%s1000_s1 + $0x2c8] sm:$0xff]  ;;  %v636_v44 = vmov 0.0  }
  0x27   :  { %v585_v62 = vpack.c.bf16 %v97_v59, %v96_v58  ;;  %v587_v63 = vpack.c.bf16 %v115_v61, %v114_v60  ;;  %v98_v0 = vld [vmem:[%s1000_s1 + $0x240] sm:$0xff]  ;;  %v99_v1 = vld [vmem:[%s1000_s1 + $0x248] sm:$0xff]  ;;  %v116_v2 = vld [vmem:[%s1000_s1 + $0x2d0] sm:$0xff]  ;;  %606 = vset.pattern.permute.xlu0 %v635_v22  ;;  %v354_v42 = vand.u32 127, %v353_v40 }
  0x28   :  { %v117_v3 = vld [vmem:[%s1000_s1 + $0x2d8] sm:$0xff]  ;;  %v589_v4 = vpack.c.bf16 %v99_v1, %v98_v0  ;;  %v100_v6 = vld [vmem:[%s1000_s1 + $0x250] sm:$0xff]  ;;  %v118_v8 = vld [vmem:[%s1000_s1 + $0x2e0] sm:$0xff] }
  0x29   :  { %578 = vmatpush3.bf16.msra.mxu0 %v577_v50  ;;  %v591_v5 = vpack.c.bf16 %v117_v3, %v116_v2  ;;  %v101_v7 = vld [vmem:[%s1000_s1 + $0x258] sm:$0xff]  ;;  %v119_v9 = vld [vmem:[%s1000_s1 + $0x2e8] sm:$0xff]  ;;  %v102_v12 = vld [vmem:[%s1000_s1 + $0x260] sm:$0xff] }
  0x2a   :  { %580 = vmatprep.subr.bf16.mxu0 %v579_v51  ;;  %v593_v10 = vpack.c.bf16 %v101_v7, %v100_v6  ;;  %v595_v11 = vpack.c.bf16 %v119_v9, %v118_v8  ;;  %v103_v13 = vld [vmem:[%s1000_s1 + $0x268] sm:$0xff]  ;;  %v120_v14 = vld [vmem:[%s1000_s1 + $0x2f0] sm:$0xff]  ;;  %v121_v15 = vld [vmem:[%s1000_s1 + $0x2f8] sm:$0xff] }
  0x2b   :  { %v597_v16 = vpack.c.bf16 %v103_v13, %v102_v12  ;;  %v599_v17 = vpack.c.bf16 %v121_v15, %v120_v14  ;;  %v104_v18 = vld [vmem:[%s1000_s1 + $0x270] sm:$0xff]  ;;  %v105_v19 = vld [vmem:[%s1000_s1 + $0x278] sm:$0xff]  ;;  %v24_v21 = vld [vmem:[%s999_s0 + $0x20] sm:$0xff] }
  0x2c   :  { %v601_v20 = vpack.c.bf16 %v105_v19, %v104_v18  ;;  %v400_v24 = vld [vmem:[%s1001_s2] ss:$0 sm:$0xff] }
  0x2d   :  { %582 = vmatpush3.bf16.msra.mxu0 %v581_v56  ;;  %v355_v37 = vld [vmem:[%s1002_s3] sm:$0xff]  ;;  %s637_s3 = smov [#allocation2]  }
  0x2e   :  { %584 = vmatprep.subr.bf16.mxu0 %v583_v57 }
  0x31   :  { %586 = vmatpush3.bf16.msra.mxu0 %v585_v62 }
  0x32   :  { %588 = vmatprep.subr.bf16.mxu0 %v587_v63 }
  0x35   :  { %590 = vmatpush3.bf16.msra.mxu0 %v589_v4 }
  0x36   :  { %592 = vmatprep.subr.bf16.mxu0 %v591_v5 }
  0x39   :  { %594 = vmatpush3.bf16.msra.mxu0 %v593_v10 }
  0x3a   :  { %596 = vmatprep.subr.bf16.mxu0 %v595_v11 }
  0x3d   :  { %598 = vmatpush3.bf16.msra.mxu0 %v597_v16 }
  0x3e   :  { %600 = vmatprep.subr.bf16.mxu0 %v599_v17 }
  0x41   :  { %602 = vmatpush3.bf16.msra.mxu0 %v601_v20 }
  0x44   :  { %334 = vmatmul.mubr.f32.vlgmr.msra.gmra.mrb[2].mxu0 %v24_v21 }
  0xf7   :  { %v434_v23 = vpop.f32.mrb[0].mxu0 }
  0xf8   :  { %v435_v25 = vpop.f32.mrb[1].mxu0 }
  0xf9   :  { %v469_v26 = vpop.f32.mrb[0].mxu1  ;;  %v436_v27 = vadd.f32 %v435_v25, %v434_v23 }
  0xfa   :  { %v470_v28 = vpop.f32.mrb[1].mxu1 }
  0xfb   :  { %v471_v29 = vadd.f32 %v470_v28, %v469_v26  ;;  %v196_v30 = vadd.f32 %v436_v27, %v400_v24 }
  0xfd   :  { %v266_v31 = vadd.f32 %v471_v29, %v196_v30 }
 0x117   :  { %v504_v32 = vpop.f32.mrb[2].mxu0 }
 0x118   :  { %v505_v33 = vpop.f32.mrb[3].mxu0 }
 0x119   :  { %v506_v34 = vadd.f32 %v505_v33, %v504_v32 }
 0x11b   :  { %v336_v35 = vadd.f32 %v506_v34, %v266_v31 }
 0x11d   :  { %v341_v36 = vsel %vm339_vm0, %v336_v35, -inf  ;;  %340 = vst.msk [vmem:[%s1003_s4] sm:$0xff] %vm339_vm0, %v336_v35  ;;  %s390_s4 = sshll.u32 %s637_s3, 4  ;;  %s391_s4 = int_to_ptr.vmem [resolvable:$true] %s390_s4 }
 0x11e   :  { %342 = vmax.xlane.f32.xlu0 %v341_v36  ;;  %s611_s25 = scalar_lea.vmem %s391_s4, 16  ;;  %s615_s26 = scalar_lea.vmem %s391_s4, 32 }
 0x11f   :  { %p612_p0 = scmp.ne.s32.totalorder %s391_s4, %s611_s25  ;;  %p616_p1 = scmp.lt.s32.totalorder %s391_s4, %s391_s4 }
 0x120   :  { %p617_p2 = scmp.lt.s32.totalorder %s615_s26, %s611_s25 }
 0x122   :  { %p618_p3 = por %p617_p2, %p616_p1 }
 0x124   :  { %p619_p4 = pnand %p618_p3, %p612_p0 }
 0x134   :  { %357 = vperm.xlu0 %606, %v355_v37  }
 0x1ab   :  { %v343_v38 = vpop.xlane.xlu0 %342 }
 0x1ac   :  { %v344_v39 = vsub.f32 %v336_v35, %v343_v38 }
 0x1ae   :  { %v345_v41 = vmul.f32 1.442695, %v344_v39 }
 0x1b0   :  { %607 = vpow2.f32 %v345_v41 }
 0x1b3   :  { %v358_v43 = vpop.permute.xlu0 %357 }
 0x1b4   :  { %vm359_vm1 = vcmp.eq.s32.totalorder %v354_v42, %v358_v43 }
 0x1b5   :  { %v401_v45 = vsel %vm359_vm1, 1.0, %v636_v44 }
 0x1b6   :  { %v362_v48 = vmul.f32 %v401_v45, %v336_v35 }
 0x1b8   :  { %v363_v49 = vsel %vm339_vm0, %v362_v48, 0.0 }
 0x1ba   :  { %v608_v46 = vpop.eup %607 }
 0x1bb   :  { %v347_v47 = vsel %vm339_vm0, %v608_v46, 0.0 }
 0x1bc   :  { %348 = vadd.xlane.f32.xlu1 %v347_v47 }
 0x1c0   :  { %364 = vadd.xlane.f32.xlu1 %v363_v49 }
 0x249   :  { %v349_v50 = vpop.xlane.xlu1 %348 }
 0x24a   :  { %609 = vlog2.f32 %v349_v50 }
 0x24d   :  { %v365_v54 = vpop.xlane.xlu1 %364 }
 0x254   :  { %v610_v51 = vpop.eup %609 }
 0x255   :  { %v351_v52 = vmul.f32 0.6931472, %v610_v51 }
 0x257   :  { %v352_v53 = vadd.f32 %v351_v52, %v343_v38 }
 0x259   :  { %v366_v55 = vsub.f32 %v352_v53, %v365_v54 }
 0x25b   :  { %v374_v56 = vrot.slane %v366_v55, 4 }
 0x25d   :  { %v375_v57 = vadd.f32 %v374_v56, %v366_v55 }
 0x25f   :  { %v376_v58 = vrot.slane %v375_v57, 2 }
 0x261   :  { %v377_v59 = vadd.f32 %v376_v58, %v375_v57 }
 0x263   :  { %v378_v60 = vrot.slane %v377_v59, 1 }
 0x265   :  { %v379_v61 = vadd.f32 %v378_v60, %v377_v59 }
 0x267   :  { %381 = vst.msk [vmem:[#allocation2] sm:$0x1] %vm380_vm2, %v379_v61 }
 0x268   :  { %622 = shalt.err (!%p619_p4)
}
 0x269   :  { %s623_s29 = scalar_lea.hbm %s1004_s5, 16 }
 0x26a   :  { %p624_p5 = scmp.ne.s32.totalorder %s1004_s5, %s623_s29  ;;  %p627_p6 = scmp.lt.u32.totalorder %s623_s29, %s1004_s5 }
 0x26c   :  { %p629_p7 = pnand %p627_p6, %p624_p5 }
 0x26e   :  { %632 = shalt.err (!%p629_p7)
}
 0x26f   :  { %393 = dma.vmem_to_hbm [thread:$0]  %s391_s4, 16, %s1004_s5, [#allocation3]  }
 0x270   :  { %633 = dma.done.wait [#allocation3], 16  }
 0x271   :  { %634 = vsyncadd [#allocation3], 4294967280 }
 0x272   :  { %399 = vsyncpa [#allocation3], 1 }

</bundles_post_ra>
